<compile_context>
chip_gen: v6e
topology: v6e:2x2x1
jax: 0.10.0
libtpu: 0.0.40
codegen_flags: <defaults>
</compile_context>

<pallas_src>
import functools

import jax
import jax.numpy as jnp
from jax.experimental import pallas as pl
from jax.experimental.pallas import tpu as pltpu


def _round_up(x, m):
    return ((x + m - 1) // m) * m


def _cdiv(a, b):
    return -(-a // b)


# ---------------------------------------------------------------------------
# Generation-aware hardware info (VMEM cap / TensorCore count), with fallbacks.
# ---------------------------------------------------------------------------
def _tpu_info():
    vmem_bytes = 128 << 20          # v5e / v6e physical VMEM
    two_cores = False
    try:
        vmem_bytes = int(pltpu.get_tpu_info().vmem_capacity_bytes)
    except Exception:
        pass
    try:
        kind = jax.devices()[0].device_kind.lower()
        if "v7" in kind:
            two_cores = True
            vmem_bytes = min(vmem_bytes, 64 << 20)   # per-TC VMEM on v7x
    except Exception:
        pass
    # Never request the full physical VMEM: leave headroom for Mosaic internal
    # scratch, semaphores, etc. (~54 MiB on v7x, ~108 MiB on v5e/v6e).
    vmem_cap = min(int(vmem_bytes * 0.85), vmem_bytes - (8 << 20))
    return vmem_cap, two_cores


# ---------------------------------------------------------------------------
# Kernel
# ---------------------------------------------------------------------------
def projection_head_kernel(x_ref, w1_ref, params_ref, w2_ref, b2_ref, o_ref,
                           *, inv_in_dim):
    # ---- fc1 on the MXU (low-precision inputs, f32 accumulation) ----
    h = jnp.dot(x_ref[...], w1_ref[...], preferred_element_type=jnp.float32)
    h = h + params_ref[0:1, :]                      # + b1 (padded lanes stay 0)

    # ---- Mish with a single EUP exp ----
    # tanh(softplus(h)) = (u^2 - 1) / (u^2 + 1),  u = 1 + e^h.
    # exp is clamped at 20: u^2 ~ 2.4e17 so the ratio already rounds to 1.0 in
    # f32 -- no extra where/select needed.
    e = jnp.exp(jnp.minimum(h, 20.0))
    u = 1.0 + e
    u2 = u * u
    h = h * ((u2 - 1.0) * pl.reciprocal(u2 + 1.0, approx=True))   # mish(0)==0 on pads

    # ---- Dropout: identity in eval mode ----
    # TODO(synk): training-mode dropout via pltpu.prng_seed / prng_random_bits.

    # ---- LayerNorm over the *true* feature count (padded lanes of h are 0) ----
    mean = jnp.sum(h, axis=-1, keepdims=True) * inv_in_dim
    msq = jnp.sum(h * h, axis=-1, keepdims=True) * inv_in_dim
    var = jnp.maximum(msq - mean * mean, 0.0)
    hn = (h - mean) * jax.lax.rsqrt(var + 1e-5)
    hn = hn * params_ref[1:2, :] + params_ref[2:3, :]   # gamma, beta (0 on pads)

    # ---- fc2 on the MXU ----
    out = jnp.dot(hn.astype(w2_ref.dtype), w2_ref[...],
                  preferred_element_type=jnp.float32)
    o_ref[...] = (out + b2_ref[...]).astype(o_ref.dtype)


# ---------------------------------------------------------------------------
# One-time parameter preparation (pad + cast OUTSIDE the hot path).
# ---------------------------------------------------------------------------
def prepare_projection_head_params(w1, b1, gamma, beta, w2, b2, *,
                                   matmul_dtype=jnp.bfloat16):
    """w1: (in_dim, in_dim), w2: (in_dim, out_dim) -- pre-transposed vs.
    PyTorch's (out, in) nn.Linear layout so the kernel computes x @ W + b.
    Call once and reuse the returned dict for every forward."""
    in_dim = w1.shape[0]
    out_dim = w2.shape[1]
    in_p = _round_up(in_dim, 128)
    out_p = _round_up(out_dim, 128)
    f32 = jnp.float32

    w1_p = w1 if in_p == in_dim else jnp.pad(w1, ((0, in_p - in_dim),) * 2)
    w1_p = w1_p.astype(matmul_dtype)
    w2_p = (w2 if (in_p == in_dim and out_p == out_dim)
            else jnp.pad(w2, ((0, in_p - in_dim), (0, out_p - out_dim))))
    w2_p = w2_p.astype(matmul_dtype)
    params = jnp.stack([                              # (3, in_p), zeros on pads
        jnp.pad(b1.astype(f32), (0, in_p - in_dim)),
        jnp.pad(gamma.astype(f32), (0, in_p - in_dim)),
        jnp.pad(beta.astype(f32), (0, in_p - in_dim)),
    ])
    b2_p = jnp.pad(b2.astype(f32), (0, out_p - out_dim)).reshape(1, out_p)

    return dict(w1=w1_p, params=params, w2=w2_p, b2=b2_p,
                in_dim=in_dim, out_dim=out_dim, in_p=in_p, out_p=out_p,
                matmul_dtype=matmul_dtype)


def _projection_head_fallback(x, p, out_dtype):
    """Pure-JAX fallback (same fused math) for when weights don't fit in VMEM."""
    in_dim, in_p = p["in_dim"], p["in_p"]
    x_p = x if in_p == in_dim else jnp.pad(x, ((0, 0), (0, in_p - in_dim)))
    h = jnp.dot(x_p.astype(p["matmul_dtype"]), p["w1"],
                preferred_element_type=jnp.float32) + p["params"][0:1]
    h = h * jnp.tanh(jax.nn.softplus(h))
    inv = 1.0 / in_dim
    mean = jnp.sum(h, -1, keepdims=True) * inv
    var = jnp.maximum(jnp.sum(h * h, -1, keepdims=True) * inv - mean * mean, 0.0)
    hn = (h - mean) * jax.lax.rsqrt(var + 1e-5)
    hn = hn * p["params"][1:2] + p["params"][2:3]
    out = jnp.dot(hn.astype(p["matmul_dtype"]), p["w2"],
                  preferred_element_type=jnp.float32) + p["b2"]
    return out[:, :p["out_dim"]].astype(out_dtype)


# ---------------------------------------------------------------------------
# Hot-path apply (only the activation is padded / cast here).
# ---------------------------------------------------------------------------
def projection_head_apply(x, prepared, *, out_dtype=None):
    B, in_dim = x.shape
    assert in_dim == prepared["in_dim"], "feature dim mismatch with prepared params"
    in_p, out_p, out_dim = prepared["in_p"], prepared["out_p"], prepared["out_dim"]
    matmul_dtype = prepared["matmul_dtype"]
    out_dtype = x.dtype if out_dtype is None else out_dtype

    w1_p, params, w2_p, b2_p = (prepared["w1"], prepared["params"],
                                prepared["w2"], prepared["b2"])

    vmem_cap, two_cores = _tpu_info()
    mm_isz = jnp.dtype(matmul_dtype).itemsize
    out_isz = jnp.dtype(out_dtype).itemsize
    weight_bytes = ((w1_p.size + w2_p.size) * mm_isz
                    + (params.size + b2_p.size) * 4)

    def vmem_est(bb):
        return (weight_bytes                         # single-buffered constants
                + 2 * bb * in_p * mm_isz             # double-buffered x tiles
                + 2 * bb * out_p * out_isz           # double-buffered out tiles
                + 4 * bb * in_p * 4                  # f32 intermediates (h,u2,t,hn)
                + (2 << 20))                         # misc slack

    # Balanced row tiles: minimize zero-row padding; bigger tiles when VMEM allows.
    target = 512 if vmem_cap >= (96 << 20) else 256
    n_tiles = max(1, _cdiv(B, target))
    if two_cores and n_tiles == 1 and B >= 16:
        n_tiles = 2                    # >=2 grid steps so both v7x TCs get work
    block_b = _round_up(_cdiv(B, n_tiles), 8)
    while block_b > 8 and vmem_est(block_b) > vmem_cap:
        block_b = _round_up(_cdiv(block_b, 2), 8)

    if vmem_est(block_b) > vmem_cap:
        # Weights alone do not fit in VMEM on this generation: degrade gracefully.
        # TODO(synk): K/N-tiled variant ("arbitrary" hidden-dim grid axis with an
        # f32 accumulator) for very large in_dim instead of this fallback.
        return _projection_head_fallback(x, prepared, out_dtype)

    b_p = _round_up(B, block_b)
    grid = (b_p // block_b,)

    # Only pad / cast the activation, and only when actually required.
    x_p = x
    if b_p != B or in_p != in_dim:
        x_p = jnp.pad(x, ((0, b_p - B), (0, in_p - in_dim)))
    if x_p.dtype != matmul_dtype:
        x_p = x_p.astype(matmul_dtype)

    vmem_limit = int(min(max(vmem_est(block_b), 16 << 20), vmem_cap))

    kernel = functools.partial(projection_head_kernel, inv_in_dim=1.0 / in_dim)

    # memory_space-only BlockSpec => whole array resident in VMEM, single-buffered
    # (no block_shape, so it is not pipelined / not double-buffered).
    vmem_whole = pl.BlockSpec(memory_space=pltpu.MemorySpace.VMEM)

    out_padded = pl.pallas_call(
        kernel,
        out_shape=jax.ShapeDtypeStruct((b_p, out_p), out_dtype),
        grid=grid,
        in_specs=[
            pl.BlockSpec((block_b, in_p), lambda i: (i, 0)),  # x row tile (pipelined)
            vmem_whole,                                       # W1
            vmem_whole,                                       # (b1, gamma, beta)
            vmem_whole,                                       # W2
            vmem_whole,                                       # b2
        ],
        out_specs=pl.BlockSpec((block_b, out_p), lambda i: (i, 0)),
        compiler_params=pltpu.CompilerParams(
            dimension_semantics=("parallel",),
            vmem_limit_bytes=vmem_limit,
        ),
    )(x_p, w1_p, params, w2_p, b2_p)

    if b_p != B or out_p != out_dim:
        out_padded = out_padded[:B, :out_dim]
    return out_padded


def projection_head(x, w1, b1, gamma, beta, w2, b2, *,
                    matmul_dtype=jnp.bfloat16, out_dtype=None):
    """Convenience one-shot wrapper. For repeated calls, use
    prepare_projection_head_params(...) once + projection_head_apply(...)."""
    prepared = prepare_projection_head_params(
        w1, b1, gamma, beta, w2, b2, matmul_dtype=matmul_dtype)
    return projection_head_apply(x, prepared, out_dtype=out_dtype)


if __name__ == "__main__":
    # Small shapes consistent with the module's forward.
    B, in_dim, out_dim = 8, 32, 16

    key = jax.random.PRNGKey(0)
    kx, k1, k1b, k2, k2b, kg, kb = jax.random.split(key, 7)

    x = jax.random.normal(kx, (B, in_dim), dtype=jnp.float32)

    bound1 = 1.0 / (in_dim ** 0.5)
    w1 = jax.random.uniform(k1, (in_dim, in_dim), jnp.float32, -bound1, bound1)
    b1 = jax.random.uniform(k1b, (in_dim,), jnp.float32, -bound1, bound1)
    w2 = jax.random.uniform(k2, (in_dim, out_dim), jnp.float32, -bound1, bound1)
    b2 = jax.random.uniform(k2b, (out_dim,), jnp.float32, -bound1, bound1)
    gamma = 1.0 + 0.1 * jax.random.normal(kg, (in_dim,), jnp.float32)
    beta = 0.1 * jax.random.normal(kb, (in_dim,), jnp.float32)

    # Pure-JAX f32 reference (matches the PyTorch module in eval mode).
    def ref(xx):
        h = xx @ w1 + b1
        h = h * jnp.tanh(jax.nn.softplus(h))        # mish
        mean = h.mean(-1, keepdims=True)
        var = ((h - mean) ** 2).mean(-1, keepdims=True)
        h = (h - mean) / jnp.sqrt(var + 1e-5) * gamma + beta
        return h @ w2 + b2

    ref_out = ref(x)

    # f32 MXU-input path: validates fused math / padding / LayerNorm masking.
    prep_f32 = prepare_projection_head_params(
        w1, b1, gamma, beta, w2, b2, matmul_dtype=jnp.float32)
    out_f32 = projection_head_apply(x, prep_f32)
    jax.block_until_ready(out_f32)
    assert out_f32.shape == (B, out_dim)
    assert jnp.allclose(out_f32, ref_out, atol=2e-2, rtol=2e-2), "f32 path mismatch"

    # Default bf16 MXU-input path (performance configuration); prepare-once, apply.
    prep_bf16 = prepare_projection_head_params(
        w1, b1, gamma, beta, w2, b2, matmul_dtype=jnp.bfloat16)
    out_bf16 = projection_head_apply(x, prep_bf16)
    jax.block_until_ready(out_bf16)
    assert out_bf16.shape == (B, out_dim)
    assert jnp.allclose(out_bf16, ref_out, atol=3e-2, rtol=3e-2), "bf16 path mismatch"

    print("KERNEL_OK")
</pallas_src>

<mosaic_0001>
module attributes {stable_mosaic.version = 11 : i64} {
  func.func @projection_head_kernel(%arg0: i32, %arg1: memref<8x128xf32, #tpu.memory_space<vmem>>, %arg2: memref<128x128xf32, #tpu.memory_space<vmem>>, %arg3: memref<3x128xf32, #tpu.memory_space<vmem>>, %arg4: memref<128x128xf32, #tpu.memory_space<vmem>>, %arg5: memref<1x128xf32, #tpu.memory_space<vmem>>, %arg6: memref<8x128xf32, #tpu.memory_space<vmem>>) attributes {dimension_semantics = [#tpu.dimension_semantics<parallel>], iteration_bounds = array<i64: 1>, scalar_prefetch = 0 : i64, scratch_operands = 0 : i64, tpu.core_type = #tpu.core_type<tc>, window_params = [{transform_indices = @transform_0, window_bounds = array<i64: 8, 128>}, {pipeline_mode = #tpu.pipeline_mode<synchronous>, transform_indices = @transform_1, window_bounds = array<i64: 128, 128>}, {pipeline_mode = #tpu.pipeline_mode<synchronous>, transform_indices = @transform_2, window_bounds = array<i64: 3, 128>}, {pipeline_mode = #tpu.pipeline_mode<synchronous>, transform_indices = @transform_3, window_bounds = array<i64: 128, 128>}, {pipeline_mode = #tpu.pipeline_mode<synchronous>, transform_indices = @transform_4, window_bounds = array<i64: 1, 128>}, {transform_indices = @transform_5, window_bounds = array<i64: 8, 128>}]} {
    %c0 = arith.constant 0 : index
    %c0_0 = arith.constant 0 : index
    %0 = vector.load %arg1[%c0, %c0_0] : memref<8x128xf32, #tpu.memory_space<vmem>>, vector<8x128xf32>
    %c0_1 = arith.constant 0 : index
    %c0_2 = arith.constant 0 : index
    %1 = vector.load %arg2[%c0_1, %c0_2] : memref<128x128xf32, #tpu.memory_space<vmem>>, vector<128x128xf32>
    %cst = arith.constant dense<0.000000e+00> : vector<8x128xf32>
    %2 = tpu.matmul %0, %1, %cst {dimension_numbers = #tpu.dot_dimension_numbers<[1], [0], [0], [1], [0, 0, 1, 1], [], []>} : vector<8x128xf32>, vector<128x128xf32>, vector<8x128xf32> -> vector<8x128xf32>
    %c0_3 = arith.constant 0 : index
    %c0_4 = arith.constant 0 : index
    %3 = vector.load %arg3[%c0_3, %c0_4] : memref<3x128xf32, #tpu.memory_space<vmem>>, vector<1x128xf32>
    %4 = vector.broadcast %3 : vector<1x128xf32> to vector<8x128xf32>
    %5 = arith.addf %2, %4 : vector<8x128xf32>
    %cst_5 = arith.constant 2.000000e+01 : f32
    %6 = vector.broadcast %cst_5 : f32 to vector<8x128xf32>
    %7 = arith.minimumf %5, %6 : vector<8x128xf32>
    %8 = math.exp %7 : vector<8x128xf32>
    %cst_6 = arith.constant 1.000000e+00 : f32
    %9 = vector.broadcast %cst_6 : f32 to vector<8x128xf32>
    %10 = arith.addf %9, %8 : vector<8x128xf32>
    %11 = arith.mulf %10, %10 : vector<8x128xf32>
    %cst_7 = arith.constant 1.000000e+00 : f32
    %12 = vector.broadcast %cst_7 : f32 to vector<8x128xf32>
    %13 = arith.subf %11, %12 : vector<8x128xf32>
    %cst_8 = arith.constant 1.000000e+00 : f32
    %14 = vector.broadcast %cst_8 : f32 to vector<8x128xf32>
    %15 = arith.addf %11, %14 : vector<8x128xf32>
    %16 = tpu.reciprocal %15 {approx = true} : vector<8x128xf32> -> vector<8x128xf32>
    %17 = arith.mulf %13, %16 : vector<8x128xf32>
    %18 = arith.mulf %5, %17 : vector<8x128xf32>
    %cst_9 = arith.constant dense<0.000000e+00> : vector<8xf32>
    %19 = vector.multi_reduction <add>, %18, %cst_9 [1] : vector<8x128xf32> to vector<8xf32>
    %20 = vector.shape_cast %19 : vector<8xf32> to vector<8x1xf32>
    %cst_10 = arith.constant 3.125000e-02 : f32
    %21 = vector.broadcast %cst_10 : f32 to vector<8x1xf32>
    %22 = arith.mulf %20, %21 : vector<8x1xf32>
    %23 = arith.mulf %18, %18 : vector<8x128xf32>
    %cst_11 = arith.constant dense<0.000000e+00> : vector<8xf32>
    %24 = vector.multi_reduction <add>, %23, %cst_11 [1] : vector<8x128xf32> to vector<8xf32>
    %25 = vector.shape_cast %24 : vector<8xf32> to vector<8x1xf32>
    %cst_12 = arith.constant 3.125000e-02 : f32
    %26 = vector.broadcast %cst_12 : f32 to vector<8x1xf32>
    %27 = arith.mulf %25, %26 : vector<8x1xf32>
    %28 = arith.mulf %22, %22 : vector<8x1xf32>
    %29 = arith.subf %27, %28 : vector<8x1xf32>
    %cst_13 = arith.constant 0.000000e+00 : f32
    %30 = vector.broadcast %cst_13 : f32 to vector<8x1xf32>
    %31 = arith.maximumf %29, %30 : vector<8x1xf32>
    %32 = vector.broadcast %22 : vector<8x1xf32> to vector<8x128xf32>
    %33 = arith.subf %18, %32 : vector<8x128xf32>
    %cst_14 = arith.constant 9.99999974E-6 : f32
    %34 = vector.broadcast %cst_14 : f32 to vector<8x1xf32>
    %35 = arith.addf %31, %34 : vector<8x1xf32>
    %36 = math.rsqrt %35 : vector<8x1xf32>
    %37 = vector.broadcast %36 : vector<8x1xf32> to vector<8x128xf32>
    %38 = arith.mulf %33, %37 : vector<8x128xf32>
    %c1 = arith.constant 1 : index
    %c0_15 = arith.constant 0 : index
    %39 = vector.load %arg3[%c1, %c0_15] : memref<3x128xf32, #tpu.memory_space<vmem>>, vector<1x128xf32>
    %40 = vector.broadcast %39 : vector<1x128xf32> to vector<8x128xf32>
    %41 = arith.mulf %38, %40 : vector<8x128xf32>
    %c2 = arith.constant 2 : index
    %c0_16 = arith.constant 0 : index
    %42 = vector.load %arg3[%c2, %c0_16] : memref<3x128xf32, #tpu.memory_space<vmem>>, vector<1x128xf32>
    %43 = vector.broadcast %42 : vector<1x128xf32> to vector<8x128xf32>
    %44 = arith.addf %41, %43 : vector<8x128xf32>
    %c0_17 = arith.constant 0 : index
    %c0_18 = arith.constant 0 : index
    %45 = vector.load %arg4[%c0_17, %c0_18] : memref<128x128xf32, #tpu.memory_space<vmem>>, vector<128x128xf32>
    %cst_19 = arith.constant dense<0.000000e+00> : vector<8x128xf32>
    %46 = tpu.matmul %44, %45, %cst_19 {dimension_numbers = #tpu.dot_dimension_numbers<[1], [0], [0], [1], [0, 0, 1, 1], [], []>} : vector<8x128xf32>, vector<128x128xf32>, vector<8x128xf32> -> vector<8x128xf32>
    %c0_20 = arith.constant 0 : index
    %c0_21 = arith.constant 0 : index
    %47 = vector.load %arg5[%c0_20, %c0_21] : memref<1x128xf32, #tpu.memory_space<vmem>>, vector<1x128xf32>
    %48 = vector.broadcast %47 : vector<1x128xf32> to vector<8x128xf32>
    %49 = arith.addf %46, %48 : vector<8x128xf32>
    %c0_22 = arith.constant 0 : index
    %c0_23 = arith.constant 0 : index
    %50 = vector.load %arg6[%c0_22, %c0_23] : memref<8x128xf32, #tpu.memory_space<vmem>>, vector<8x128xf32>
    tpu.vector_store %arg6[%c0_22, %c0_23], %49 {strides = array<i32>} : memref<8x128xf32, #tpu.memory_space<vmem>>, vector<8x128xf32>,
    return
  }
  func.func @transform_0(%arg0: i32) -> (i32, i32) {
    %c0_i32 = arith.constant 0 : i32
    %c0_i32_0 = arith.constant 0 : i32
    return %arg0, %c0_i32 : i32, i32
  }
  func.func @transform_1(%arg0: i32) -> (i32, i32) {
    %c0_i32 = arith.constant 0 : i32
    %c0_i32_0 = arith.constant 0 : i32
    %c0_i32_1 = arith.constant 0 : i32
    return %c0_i32, %c0_i32_0 : i32, i32
  }
  func.func @transform_2(%arg0: i32) -> (i32, i32) {
    %c0_i32 = arith.constant 0 : i32
    %c0_i32_0 = arith.constant 0 : i32
    %c0_i32_1 = arith.constant 0 : i32
    return %c0_i32, %c0_i32_0 : i32, i32
  }
  func.func @transform_3(%arg0: i32) -> (i32, i32) {
    %c0_i32 = arith.constant 0 : i32
    %c0_i32_0 = arith.constant 0 : i32
    %c0_i32_1 = arith.constant 0 : i32
    return %c0_i32, %c0_i32_0 : i32, i32
  }
  func.func @transform_4(%arg0: i32) -> (i32, i32) {
    %c0_i32 = arith.constant 0 : i32
    %c0_i32_0 = arith.constant 0 : i32
    %c0_i32_1 = arith.constant 0 : i32
    return %c0_i32, %c0_i32_0 : i32, i32
  }
  func.func @transform_5(%arg0: i32) -> (i32, i32) {
    %c0_i32 = arith.constant 0 : i32
    %c0_i32_0 = arith.constant 0 : i32
    return %arg0, %c0_i32 : i32, i32
  }
}

</mosaic_0001>

<bundles_post_ra>
// kernel: tpu_custom_call.1
= control target key start
LH: loop header
LB: loop body
LE: loop exit
PB: predicated region body
PF: predicated region fallthrough
CT: control target
= control target key end

     0   :  { %10 = vsyncpa [#allocation3], 0  ;;  %s646_s0 = inlined_call_operand.hbm [shape: f32[8,128], index: 0, kind: input, shape index: {}]   ;;  %s647_s1 = inlined_call_operand.hbm [shape: f32[128,128], index: 1, kind: input, shape index: {}]   ;;  %s648_s2 = inlined_call_operand.hbm [shape: f32[3,128], index: 2, kind: input, shape index: {}]   ;;  %s649_s3 = inlined_call_operand.hbm [shape: f32[128,128], index: 3, kind: input, shape index: {}]   ;;  %s650_s4 = inlined_call_operand.vmem [shape: f32[1,128], index: 4, kind: input, shape index: {}]   ;;  %s651_s5 = inlined_call_operand.hbm [shape: f32[8,128], index: 5, kind: output, shape index: {}]  }
   0x1   :  { %11 = vsyncpa [#allocation6], 0 }
   0x2   :  { %12 = vsyncpa [#allocation9], 0 }
   0x3   :  { %13 = vsyncpa [#allocation4], 0  ;;  %s543_s18 = smov [#allocation5]  }
   0x4   :  { %s29_s19 = sshll.u32 %s543_s18, 4  ;;  %s30_s19 = int_to_ptr.vmem [resolvable:$true] %s29_s19 }
   0x5   :  { %s443_s20 = scalar_lea.vmem %s30_s19, 2048  ;;  %p448_p1 = scmp.lt.s32.totalorder %s30_s19, %s30_s19 }
   0x6   :  { %p444_p0 = scmp.ne.s32.totalorder %s30_s19, %s443_s20  ;;  %p449_p2 = scmp.lt.s32.totalorder %s443_s20, %s443_s20 }
   0x8   :  { %p450_p3 = por %p449_p2, %p448_p1 }
   0xa   :  { %p451_p4 = pnand %p450_p3, %p444_p0 }
   0xc   :  { %454 = shalt.err (!%p451_p4)
}
   0xd   :  { %s544_s21 = smov 128   ;;  %s545_s22 = smov 8  }
   0xe   :  { %35 = dma.hbm_to_vmem [thread:$0]  %s647_s1, 2048, %s30_s19, [#allocation6], %s544_s21, %s544_s21, %s545_s22  }
   0xf   :  { %s546_s25 = smov [#allocation2]   ;;  %s547_s27 = smov [#allocation7]  }
  0x10   :  { %s20_s26 = sshll.u32 %s546_s25, 4  ;;  %s42_s28 = sshll.u32 %s547_s27, 4  ;;  %s21_s26 = int_to_ptr.vmem [resolvable:$true] %s20_s26  ;;  %s43_s28 = int_to_ptr.vmem [resolvable:$true] %s42_s28 }
  0x11   :  { %s463_s29 = scalar_lea.vmem %s21_s26, 128  ;;  %p468_p6 = scmp.lt.s32.totalorder %s21_s26, %s21_s26 }
  0x12   :  { %p464_p5 = scmp.ne.s32.totalorder %s21_s26, %s463_s29  ;;  %p469_p7 = scmp.lt.s32.totalorder %s463_s29, %s463_s29 }
  0x14   :  { %p470_p8 = por %p469_p7, %p468_p6 }
  0x16   :  { %p471_p9 = pnand %p470_p8, %p464_p5 }
  0x18   :  { %474 = shalt.err (!%p471_p9)
}
  0x19   :  { %23 = dma.hbm_to_vmem [thread:$0]  %s646_s0, 128, %s21_s26, [#allocation3]  }
  0x1a   :  { %s483_s7 = scalar_lea.vmem %s43_s28, 64  ;;  %p488_p11 = scmp.lt.s32.totalorder %s43_s28, %s43_s28 }
  0x1b   :  { %p484_p10 = scmp.ne.s32.totalorder %s43_s28, %s483_s7  ;;  %p489_p12 = scmp.lt.s32.totalorder %s483_s7, %s483_s7 }
  0x1d   :  { %p490_p13 = por %p489_p12, %p488_p11 }
  0x1f   :  { %p491_p0 = pnand %p490_p13, %p484_p10 }
  0x21   :  { %494 = shalt.err (!%p491_p0)
}
  0x22   :  { %45 = dma.hbm_to_vmem [thread:$0]  %s648_s2, 64, %s43_s28, [#allocation6]  }
  0x23   :  { %s548_s9 = smov [#allocation8]  }
  0x24   :  { %s51_s10 = sshll.u32 %s548_s9, 4  ;;  %s52_s10 = int_to_ptr.vmem [resolvable:$true] %s51_s10 }
  0x25   :  { %s503_s11 = scalar_lea.vmem %s52_s10, 2048  ;;  %p508_p2 = scmp.lt.s32.totalorder %s52_s10, %s52_s10 }
  0x26   :  { %p504_p1 = scmp.ne.s32.totalorder %s52_s10, %s503_s11  ;;  %p509_p3 = scmp.lt.s32.totalorder %s503_s11, %s503_s11 }
  0x28   :  { %p510_p4 = por %p509_p3, %p508_p2 }
  0x2a   :  { %p511_p5 = pnand %p510_p4, %p504_p1 }
  0x2c   :  { %514 = shalt.err (!%p511_p5)
}
  0x2d   :  { %57 = dma.hbm_to_vmem [thread:$0]  %s649_s3, 2048, %s52_s10, [#allocation9], %s544_s21, %s544_s21, %s545_s22  }
  0x2e   :  { %535 = dma.done.wait [#allocation3], 128  }
  0x2f   :  { %536 = vsyncadd [#allocation3], 4294967168 }
  0x30   :  { %537 = dma.done.wait [#allocation6], 2112  }
  0x31   :  { %538 = vsyncadd [#allocation6], 4294965184 }
  0x32   :  { %539 = dma.done.wait [#allocation9], 2048  }
  0x33   :  { %540 = vsyncadd [#allocation9], 4294965248  ;;  %v549_v0 = vmov 0.0   ;;  %vm550_vm0 = vmmov 0   ;;  %v88_v1 = vld [vmem:[#allocation5 + $0x78] sm:$0xff]  ;;  %v87_v2 = vld [vmem:[#allocation5 + $0x70] sm:$0xff] }
  0x34   :  { %350 = vmatprep.subr.mxu0 %v549_v0  ;;  %382 = vmatprep.mubr.msk.f32.mxu0 %vm550_vm0, %v549_v0  ;;  %v86_v3 = vld [vmem:[#allocation5 + $0x68] sm:$0xff]  ;;  %v85_v4 = vld [vmem:[#allocation5 + $0x60] sm:$0xff]  ;;  %v84_v5 = vld [vmem:[#allocation5 + $0x58] sm:$0xff]  ;;  %s551_s13 = smov [#allocation10]  }
  0x35   :  { %385 = vmatprep.subr.mxu1 %v549_v0  ;;  %417 = vmatprep.mubr.msk.f32.mxu1 %vm550_vm0, %v549_v0  ;;  %v83_v6 = vld [vmem:[#allocation5 + $0x50] sm:$0xff]  ;;  %v82_v7 = vld [vmem:[#allocation5 + $0x48] sm:$0xff]  ;;  %v81_v8 = vld [vmem:[#allocation5 + $0x40] sm:$0xff]  ;;  %s300_s14 = sshll.u32 %s551_s13, 4  ;;  %s301_s14 = int_to_ptr.vmem [resolvable:$true] %s300_s14 }
  0x36   :  { %351 = vmatpush3.msra.mxu0 %v88_v1  ;;  %v80_v9 = vld [vmem:[#allocation5 + $0x38] sm:$0xff]  ;;  %v79_v10 = vld [vmem:[#allocation5 + $0x30] sm:$0xff]  ;;  %v78_v11 = vld [vmem:[#allocation5 + $0x28] sm:$0xff]  ;;  %s515_s15 = scalar_lea.vmem %s301_s14, 128  ;;  %p520_p7 = scmp.lt.s32.totalorder %s301_s14, %s301_s14 }
  0x37   :  { %352 = vmatprep.subr.mxu0 %v549_v0  ;;  %v77_v12 = vld [vmem:[#allocation5 + $0x20] sm:$0xff]  ;;  %v76_v13 = vld [vmem:[#allocation5 + $0x18] sm:$0xff]  ;;  %v75_v14 = vld [vmem:[#allocation5 + $0x10] sm:$0xff]  ;;  %p516_p6 = scmp.ne.s32.totalorder %s301_s14, %s515_s15  ;;  %p521_p8 = scmp.lt.s32.totalorder %s515_s15, %s515_s15 }
  0x38   :  { %353 = vmatpush3.msra.mxu0 %v87_v2  ;;  %v74_v15 = vld [vmem:[#allocation5 + $0x8] sm:$0xff]  ;;  %v73_v16 = vld [vmem:[#allocation5] sm:$0xff]  ;;  %v72_v17 = vld [vmem:[#allocation2] sm:$0xff] }
  0x39   :  { %354 = vmatprep.subr.mxu0 %v549_v0  ;;  %v311_v18 = vld [vmem:[#allocation7] ss:$0 sm:$0xff]  ;;  %v214_v34 = vld [vmem:[#allocation8 + $0x70] sm:$0xff]  ;;  %v213_v35 = vld [vmem:[#allocation8 + $0x68] sm:$0xff]  ;;  %p522_p9 = por %p521_p8, %p520_p7 }
  0x3a   :  { %355 = vmatpush3.msra.mxu0 %v86_v3  ;;  %v215_v33 = vld [vmem:[#allocation8 + $0x78] sm:$0xff]  ;;  %v212_v36 = vld [vmem:[#allocation8 + $0x60] sm:$0xff]  ;;  %v210_v38 = vld [vmem:[#allocation8 + $0x50] sm:$0xff] }
  0x3b   :  { %356 = vmatprep.subr.mxu0 %v549_v0  ;;  %386 = vmatpush3.msra.mxu1 %v215_v33  ;;  %v211_v37 = vld [vmem:[#allocation8 + $0x58] sm:$0xff]  ;;  %v209_v39 = vld [vmem:[#allocation8 + $0x48] sm:$0xff]  ;;  %v208_v40 = vld [vmem:[#allocation8 + $0x40] sm:$0xff]  ;;  %p523_p10 = pnand %p522_p9, %p516_p6 }
  0x3c   :  { %357 = vmatpush3.msra.mxu0 %v85_v4  ;;  %387 = vmatprep.subr.mxu1 %v549_v0  ;;  %v207_v41 = vld [vmem:[#allocation8 + $0x38] sm:$0xff]  ;;  %v206_v42 = vld [vmem:[#allocation8 + $0x30] sm:$0xff]  ;;  %v205_v43 = vld [vmem:[#allocation8 + $0x28] sm:$0xff] }
  0x3d   :  { %358 = vmatprep.subr.mxu0 %v549_v0  ;;  %388 = vmatpush3.msra.mxu1 %v214_v34  ;;  %v204_v44 = vld [vmem:[#allocation8 + $0x20] sm:$0xff]  ;;  %v203_v45 = vld [vmem:[#allocation8 + $0x18] sm:$0xff]  ;;  %v202_v46 = vld [vmem:[#allocation8 + $0x10] sm:$0xff] }
  0x3e   :  { %359 = vmatpush3.msra.mxu0 %v84_v5  ;;  %389 = vmatprep.subr.mxu1 %v549_v0  ;;  %v201_v47 = vld [vmem:[#allocation8 + $0x8] sm:$0xff]  ;;  %v200_v48 = vld [vmem:[#allocation8] sm:$0xff]  ;;  %v313_v59 = vld [vmem:[#allocation7 + $0x1] ss:$0 sm:$0xff] }
  0x3f   :  { %360 = vmatprep.subr.mxu0 %v549_v0  ;;  %390 = vmatpush3.msra.mxu1 %v213_v35  ;;  %v314_v61 = vld [vmem:[#allocation7 + $0x2] ss:$0 sm:$0xff] }
  0x40   :  { %361 = vmatpush3.msra.mxu0 %v83_v6  ;;  %391 = vmatprep.subr.mxu1 %v549_v0 }
  0x41   :  { %362 = vmatprep.subr.mxu0 %v549_v0  ;;  %392 = vmatpush3.msra.mxu1 %v212_v36 }
  0x42   :  { %363 = vmatpush3.msra.mxu0 %v82_v7  ;;  %393 = vmatprep.subr.mxu1 %v549_v0 }
  0x43   :  { %364 = vmatprep.subr.mxu0 %v549_v0  ;;  %394 = vmatpush3.msra.mxu1 %v211_v37 }
  0x44   :  { %365 = vmatpush3.msra.mxu0 %v81_v8  ;;  %395 = vmatprep.subr.mxu1 %v549_v0 }
  0x45   :  { %366 = vmatprep.subr.mxu0 %v549_v0  ;;  %396 = vmatpush3.msra.mxu1 %v210_v38 }
  0x46   :  { %367 = vmatpush3.msra.mxu0 %v80_v9  ;;  %397 = vmatprep.subr.mxu1 %v549_v0 }
  0x47   :  { %368 = vmatprep.subr.mxu0 %v549_v0  ;;  %398 = vmatpush3.msra.mxu1 %v209_v39 }
  0x48   :  { %369 = vmatpush3.msra.mxu0 %v79_v10  ;;  %399 = vmatprep.subr.mxu1 %v549_v0 }
  0x49   :  { %370 = vmatprep.subr.mxu0 %v549_v0  ;;  %400 = vmatpush3.msra.mxu1 %v208_v40 }
  0x4a   :  { %371 = vmatpush3.msra.mxu0 %v78_v11  ;;  %401 = vmatprep.subr.mxu1 %v549_v0 }
  0x4b   :  { %372 = vmatprep.subr.mxu0 %v549_v0  ;;  %402 = vmatpush3.msra.mxu1 %v207_v41 }
  0x4c   :  { %373 = vmatpush3.msra.mxu0 %v77_v12  ;;  %403 = vmatprep.subr.mxu1 %v549_v0 }
  0x4d   :  { %374 = vmatprep.subr.mxu0 %v549_v0  ;;  %404 = vmatpush3.msra.mxu1 %v206_v42 }
  0x4e   :  { %375 = vmatpush3.msra.mxu0 %v76_v13  ;;  %405 = vmatprep.subr.mxu1 %v549_v0 }
  0x4f   :  { %376 = vmatprep.subr.mxu0 %v549_v0  ;;  %406 = vmatpush3.msra.mxu1 %v205_v43 }
  0x50   :  { %377 = vmatpush3.msra.mxu0 %v75_v14  ;;  %407 = vmatprep.subr.mxu1 %v549_v0 }
  0x51   :  { %378 = vmatprep.subr.mxu0 %v549_v0  ;;  %408 = vmatpush3.msra.mxu1 %v204_v44 }
  0x52   :  { %379 = vmatpush3.msra.mxu0 %v74_v15  ;;  %409 = vmatprep.subr.mxu1 %v549_v0 }
  0x53   :  { %380 = vmatprep.subr.mxu0 %v549_v0  ;;  %410 = vmatpush3.msra.mxu1 %v203_v45 }
  0x54   :  { %381 = vmatpush3.msra.mxu0 %v73_v16  ;;  %411 = vmatprep.subr.mxu1 %v549_v0 }
  0x55   :  { %383 = vmatmul.mubr.f32.vlgmr.msra.gmra.mxu0 %v72_v17  ;;  %412 = vmatpush3.msra.mxu1 %v202_v46 }
  0x56   :  { %413 = vmatprep.subr.mxu1 %v549_v0 }
  0x57   :  { %414 = vmatpush3.msra.mxu1 %v201_v47 }
  0x58   :  { %415 = vmatprep.subr.mxu1 %v549_v0  ;;  %v315_v0 = vld [vmem:[%s650_s4] ss:$0 sm:$0xff] }
  0x59   :  { %416 = vmatpush3.msra.mxu1 %v200_v48 }
 0x115   :  { %v160_v19 = vpop.f32.mrf.mxu0 }
 0x116   :  { %v161_v20 = vadd.f32 %v311_v18, %v160_v19 }
 0x117   :  { %v384_v21 = vpop.f32.mrf.mxu0 }
 0x118   :  { %v164_v22 = vmin.f32 %v161_v20, 20.0 }
 0x11a   :  { %v165_v23 = vmul.f32 1.442695, %v164_v22 }
 0x11c   :  { %429 = vpow2.f32 %v165_v23 }
 0x129   :  { %v430_v24 = vpop.eup %429 }
 0x12a   :  { %v167_v25 = vadd.f32 1.0, %v430_v24 }
 0x12c   :  { %v168_v26 = vmul.f32 %v167_v25, %v167_v25 }
 0x12e   :  { %v170_v27 = vadd.f32 1.0, %v168_v26  ;;  %v312_v28 = vadd.f32 -1.0, %v168_v26 }
 0x130   :  { %431 = vrcp.f32 %v170_v27 }
 0x13d   :  { %v432_v29 = vpop.eup %431 }
 0x13e   :  { %v172_v30 = vmul.f32 %v432_v29, %v312_v28 }
 0x140   :  { %v619_v31 = vmul.f32 %v172_v30, %v161_v20 }
 0x142   :  { %174 = vadd.xlane.f32.xlu0 %v619_v31  ;;  %v177_v32 = vmul.f32 %v619_v31, %v619_v31 }
 0x146   :  { %178 = vadd.xlane.f32.xlu0 %v177_v32 }
 0x1cb   :  { %v175_v49 = vpop.xlane.xlu0 %174 }
 0x1cc   :  { %v176_v50 = vmul.f32 0.03125, %v175_v49 }
 0x1ce   :  { %v181_v52 = vmul.f32 %v176_v50, %v176_v50  ;;  %v184_v57 = vsub.f32 %v619_v31, %v176_v50 }
 0x1cf   :  { %v179_v51 = vpop.xlane.xlu0 %178 }
 0x1d0   :  { %v180_v53 = vmul.f32 0.03125, %v179_v51 }
 0x1d2   :  { %v182_v54 = vsub.f32 %v180_v53, %v181_v52 }
 0x1d4   :  { %v183_v55 = vmax.f32 %v182_v54, 0.0 }
 0x1d6   :  { %v185_v56 = vadd.f32 1e-05, %v183_v55 }
 0x1d8   :  { %433 = vrsqrt.f32 %v185_v56 }
 0x1e5   :  { %v434_v58 = vpop.eup %433 }
 0x1e6   :  { %v187_v60 = vmul.f32 %v434_v58, %v184_v57 }
 0x1e8   :  { %v193_v62 = vmul.f32 %v313_v59, %v187_v60 }
 0x1ea   :  { %v199_v63 = vadd.f32 %v314_v61, %v193_v62 }
 0x1ec   :  { %418 = vmatmul.mubr.f32.vlgmr.msra.gmra.mxu1 %v199_v63 }
 0x2ac   :  { %v289_v1 = vpop.f32.mrf.mxu1 }
 0x2ad   :  { %v290_v2 = vadd.f32 %v315_v0, %v289_v1 }
 0x2ae   :  { %v419_v3 = vpop.f32.mrf.mxu1 }
 0x2af   :  { %293 = vst [vmem:[#allocation10] sm:$0xff] %v290_v2 }
 0x2b0   :  { %526 = shalt.err (!%p523_p10)
}
 0x2b1   :  { %303 = dma.vmem_to_hbm [thread:$0]  %s301_s14, 128, %s651_s5, [#allocation4]  }
 0x2b2   :  { %541 = dma.done.wait [#allocation4], 128  }
 0x2b3   :  { %542 = vsyncadd [#allocation4], 4294967168 }
 0x2b4   :  { %307 = vsyncpa [#allocation3], 1 }
 0x2b5   :  { %308 = vsyncpa [#allocation6], 1 }
 0x2b6   :  { %309 = vsyncpa [#allocation9], 1 }
 0x2b7   :  { %310 = vsyncpa [#allocation4], 1 }

</bundles_post_ra>
